<compile_context>
chip_gen: v6e
topology: v6e:2x2x1
jax: 0.10.0
libtpu: 0.0.40
codegen_flags: <defaults>
</compile_context>

<pallas_src>
import functools

import jax
import jax.numpy as jnp
from jax.experimental import pallas as pl
from jax.experimental.pallas import tpu as pltpu


def _cdiv(a, b):
    return (a + b - 1) // b


def _round_up(x, m):
    return ((x + m - 1) // m) * m


def _balanced_tile(length, cap):
    """Split `length` into roughly equal, 8-aligned tiles no larger than `cap`."""
    cap = max(8, _round_up(cap, 8))
    n_tiles = max(1, _cdiv(length, cap))
    t = _round_up(_cdiv(length, n_tiles), 8)
    return max(8, min(t, _round_up(length, 8)))


def _vmem_budget_bytes():
    """Scoped-VMEM budget derived from the actual chip generation."""
    try:
        cap = pltpu.get_tpu_info().vmem_capacity_bytes
    except Exception:  # pragma: no cover - conservative fallback (v7x-sized)
        cap = 64 * 1024 * 1024
    return min((cap * 3) // 4, 96 * 1024 * 1024)


def _vmem_usage_bytes(Bb, tq, tk, Dp, in_it, out_it, cd_it):
    use = 0
    use += 2 * Bb * tq * Dp * in_it        # q block, double-buffered
    use += 2 * 2 * Bb * tk * Dp * in_it    # k + v blocks, double-buffered
    use += 2 * Bb * tq * Dp * out_it       # output block, double-buffered
    use += Bb * tq * Dp * 4                # f32 output accumulator scratch
    use += Bb * tq * Dp * cd_it            # scaled-q scratch (compute dtype)
    use += 2 * Bb * tq * 4                 # m / l scratch (tiny)
    return use


def _fit_to_vmem(Bb, tq, tk, Dp, in_it, out_it, cd_it, budget):
    soft = int(budget * 0.85)   # headroom for compiler-internal scratch
    while _vmem_usage_bytes(Bb, tq, tk, Dp, in_it, out_it, cd_it) > soft:
        if Bb > 1:
            Bb = (Bb + 1) // 2
        elif tq > 8 and tq >= tk:
            tq = max(8, _round_up(tq // 2, 8))
        elif tk > 8:
            tk = max(8, _round_up(tk // 2, 8))
        elif tq > 8:
            tq = max(8, _round_up(tq // 2, 8))
        else:
            break
    return Bb, tq, tk


def _flash_attn_kernel(q_ref, k_ref, v_ref, o_ref, q_sc, m_sc, l_sc, acc_sc, *,
                       scale, lk_actual, tk, need_kv_mask, compute_dtype,
                       approx_recip):
    # q_ref: (Bb, tq, Dp), k_ref/v_ref: (Bb, tk, Dp), o_ref: (Bb, tq, Dp)
    kv = pl.program_id(2)

    @pl.when(kv == 0)
    def _init():
        # Scale + cast q ONCE per q tile (q block is resident across the kv axis).
        q = q_ref[...]
        if scale is not None:
            q = q * scale
        q_sc[...] = q.astype(compute_dtype)
        m_sc[...] = jnp.full(m_sc.shape, -jnp.inf, dtype=jnp.float32)
        l_sc[...] = jnp.zeros(l_sc.shape, dtype=jnp.float32)
        acc_sc[...] = jnp.zeros(acc_sc.shape, dtype=jnp.float32)

    # QK^T: contraction over the feature dim of both operands (no k transpose);
    # MXU operands in compute dtype (bf16 for f32 inputs), f32 accumulation.
    s = jnp.einsum("bqd,bkd->bqk", q_sc[...],
                   k_ref[...].astype(compute_dtype),
                   preferred_element_type=jnp.float32)  # (Bb, tq, tk) f32

    if need_kv_mask:
        # Zero-padded key rows only exist in the last kv tile; compare a small
        # (1,1,tk) iota against a scalar limit and let the select broadcast.
        # -1e30 sentinel assumes |scores| << 1e30 (true for sane inputs).
        limit = lk_actual - kv * tk
        key_local = jax.lax.broadcasted_iota(jnp.int32, (1, 1, tk), 2)
        s = jnp.where(key_local < limit, s, -1e30)

    # Online softmax update (statistics kept in f32).
    m_prev = m_sc[...]
    m_new = jnp.maximum(m_prev, jnp.max(s, axis=-1, keepdims=True))
    alpha = jnp.exp(m_prev - m_new)
    p = jnp.exp(s - m_new)

    l_sc[...] = alpha * l_sc[...] + jnp.sum(p, axis=-1, keepdims=True)
    acc_sc[...] = alpha * acc_sc[...] + jnp.einsum(
        "bqk,bkd->bqd", p.astype(compute_dtype),
        v_ref[...].astype(compute_dtype),
        preferred_element_type=jnp.float32)
    m_sc[...] = m_new

    @pl.when(kv == pl.num_programs(2) - 1)
    def _finalize():
        # Exact reciprocal for f32 outputs (one per q row, negligible cost);
        # approx (EUP) reciprocal is fine for lower-precision outputs.
        inv_l = pl.reciprocal(l_sc[...], approx=approx_recip)
        o_ref[...] = (acc_sc[...] * inv_l).astype(o_ref.dtype)


def multimodal_attention(q, k, v, scale=None, attn_mask=None, *,
                         tq_cap=None, tk_cap=None, batch_block_cap=8):
    """q: [B, Lq, D], k: [B, Lk, D], v: [B, Lk, D] -> [B, Lq, D]."""
    assert attn_mask is None, "attn_mask is not supported"  # TODO(synk): attn_mask
    B, Lq, D = q.shape
    Bk, Lk, Dk = k.shape
    assert (Bk, Dk) == (B, D) and v.shape == (B, Lk, D)

    # Match PyTorch's `if scale:` (0 / None -> no scaling).
    scale = scale if scale else None

    out_dtype = q.dtype
    in_it = jnp.dtype(q.dtype).itemsize
    out_it = jnp.dtype(out_dtype).itemsize
    # Feed the MXU bf16 when inputs are f32 (f32 accumulation is preserved).
    compute_dtype = jnp.bfloat16 if in_it >= 4 else q.dtype
    cd_it = jnp.dtype(compute_dtype).itemsize

    budget = int(_vmem_budget_bytes())
    if tq_cap is None:
        # Bigger q tiles halve K/V re-streaming; only on chips with the VMEM headroom.
        tq_cap = 512 if budget >= 64 * 1024 * 1024 else 256
    if tk_cap is None:
        tk_cap = 256

    # Lane-dense feature dim (multiple of 128) -> unmasked vector stores.
    Dp = _round_up(D, 128)
    # Balanced, 8-aligned tiles (minimal padding waste).
    tq = _balanced_tile(Lq, tq_cap)
    tk = _balanced_tile(Lk, tk_cap)

    # Small-sequence regime: pack several batch rows per grid step to amortize
    # per-step overhead and fill MXU sublanes, but keep >= 2 parallel batch
    # iterations so the 2 TensorCores of a v7x chip both get work.
    if Lq <= tq and Lk <= tk and B > 1:
        Bb = max(1, min(B, batch_block_cap, _cdiv(B, 2)))
    else:
        Bb = 1

    # VMEM-budget-aware tile fitting (shrink Bb, then tq, then tk).
    Bb, tq, tk = _fit_to_vmem(Bb, tq, tk, Dp, in_it, out_it, cd_it, budget)

    Lq_p = _round_up(Lq, tq)
    Lk_p = _round_up(Lk, tk)
    B_p = _round_up(B, Bb)

    # Zero padding is safe: padded feature columns contribute 0 to QK^T and
    # produce 0 output columns (sliced off); padded q/batch rows are sliced off;
    # padded key rows are masked to -1e30 inside the kernel.  Pad only if needed
    # (pad/slice are extra HBM passes).
    if (B_p, Lq_p, Dp) != (B, Lq, D):
        q_p = jnp.pad(q, ((0, B_p - B), (0, Lq_p - Lq), (0, Dp - D)))
    else:
        q_p = q
    if (B_p, Lk_p, Dp) != (B, Lk, D):
        k_p = jnp.pad(k, ((0, B_p - B), (0, Lk_p - Lk), (0, Dp - D)))
        v_p = jnp.pad(v, ((0, B_p - B), (0, Lk_p - Lk), (0, Dp - D)))
    else:
        k_p, v_p = k, v

    grid = (B_p // Bb, Lq_p // tq, Lk_p // tk)

    kernel = functools.partial(
        _flash_attn_kernel,
        scale=scale,
        lk_actual=Lk,
        tk=tk,
        need_kv_mask=(Lk_p != Lk),
        compute_dtype=compute_dtype,
        approx_recip=(jnp.dtype(out_dtype) != jnp.float32),
    )

    out_p = pl.pallas_call(
        kernel,
        out_shape=jax.ShapeDtypeStruct((B_p, Lq_p, Dp), out_dtype),
        grid_spec=pltpu.PrefetchScalarGridSpec(
            num_scalar_prefetch=0,
            grid=grid,
            in_specs=[
                pl.BlockSpec((Bb, tq, Dp), lambda b, qi, ki: (b, qi, 0)),
                pl.BlockSpec((Bb, tk, Dp), lambda b, qi, ki: (b, ki, 0)),
                pl.BlockSpec((Bb, tk, Dp), lambda b, qi, ki: (b, ki, 0)),
            ],
            out_specs=pl.BlockSpec((Bb, tq, Dp), lambda b, qi, ki: (b, qi, 0)),
            scratch_shapes=[
                pltpu.VMEM((Bb, tq, Dp), compute_dtype),  # scaled/cast q
                pltpu.VMEM((Bb, tq, 1), jnp.float32),     # running max m
                pltpu.VMEM((Bb, tq, 1), jnp.float32),     # running denom l
                pltpu.VMEM((Bb, tq, Dp), jnp.float32),    # output accumulator
            ],
        ),
        compiler_params=pltpu.CompilerParams(
            dimension_semantics=("parallel", "parallel", "arbitrary"),
            vmem_limit_bytes=budget,
        ),
    )(q_p, k_p, v_p)

    if (B_p, Lq_p, Dp) != (B, Lq, D):
        out_p = out_p[:B, :Lq, :D]
    return out_p


def _reference(q, k, v, scale=None):
    s = jnp.einsum("bqd,bkd->bqk", q.astype(jnp.float32), k.astype(jnp.float32))
    if scale:
        s = s * scale
    attn = jax.nn.softmax(s, axis=2)
    return jnp.einsum("bqk,bkd->bqd", attn, v.astype(jnp.float32)).astype(q.dtype)


def _check(out, ref, name, atol=2e-2, rtol=2e-2):
    err = float(jnp.max(jnp.abs(out.astype(jnp.float32) - ref.astype(jnp.float32))))
    assert jnp.allclose(out.astype(jnp.float32), ref.astype(jnp.float32),
                        atol=atol, rtol=rtol), f"{name}: max abs err = {err}"


if __name__ == "__main__":
    key = jax.random.PRNGKey(0)
    kq, kk, kv = jax.random.split(key, 3)

    # Shapes consistent with the module's 3-D usage: batch=2, seq=8, hidden=32.
    B, Lq, Lk, D = 2, 8, 8, 32
    q = jax.random.normal(kq, (B, Lq, D), dtype=jnp.float32)
    k = jax.random.normal(kk, (B, Lk, D), dtype=jnp.float32)
    v = jax.random.normal(kv, (B, Lk, D), dtype=jnp.float32)
    scale = 1.0 / (D ** 0.5)

    out = jax.block_until_ready(multimodal_attention(q, k, v, scale=scale))
    assert out.shape == (B, Lq, D)
    _check(out, _reference(q, k, v, scale=scale), "basic")

    # Multi-tile flash path: several q/kv tiles + key padding mask.
    B2, Lq2, Lk2, D2 = 2, 40, 72, 32
    kq2, kk2, kv2 = jax.random.split(jax.random.PRNGKey(1), 3)
    q2 = jax.random.normal(kq2, (B2, Lq2, D2), dtype=jnp.float32)
    k2 = jax.random.normal(kk2, (B2, Lk2, D2), dtype=jnp.float32)
    v2 = jax.random.normal(kv2, (B2, Lk2, D2), dtype=jnp.float32)
    out2 = jax.block_until_ready(
        multimodal_attention(q2, k2, v2, scale=1.0 / (D2 ** 0.5),
                             tq_cap=16, tk_cap=16))
    _check(out2, _reference(q2, k2, v2, scale=1.0 / (D2 ** 0.5)), "tiled")

    # Batch-packing path (Bb > 1) with batch padding (B=5 -> B_p=6).
    B3, L3, D3 = 5, 8, 32
    kq3, kk3, kv3 = jax.random.split(jax.random.PRNGKey(2), 3)
    q3 = jax.random.normal(kq3, (B3, L3, D3), dtype=jnp.float32)
    k3 = jax.random.normal(kk3, (B3, L3, D3), dtype=jnp.float32)
    v3 = jax.random.normal(kv3, (B3, L3, D3), dtype=jnp.float32)
    out3 = jax.block_until_ready(
        multimodal_attention(q3, k3, v3, scale=1.0 / (D3 ** 0.5)))
    _check(out3, _reference(q3, k3, v3, scale=1.0 / (D3 ** 0.5)), "batch-packed")

    print("KERNEL_OK")
</pallas_src>

<mosaic_0001>
module attributes {stable_mosaic.version = 11 : i64} {
  func.func @_flash_attn_kernel(%arg0: i32, %arg1: i32, %arg2: i32, %arg3: memref<1x8x128xf32, #tpu.memory_space<vmem>>, %arg4: memref<1x8x128xf32, #tpu.memory_space<vmem>>, %arg5: memref<1x8x128xf32, #tpu.memory_space<vmem>>, %arg6: memref<1x8x128xf32, #tpu.memory_space<vmem>>, %arg7: memref<1x8x128xbf16, #tpu.memory_space<vmem>>, %arg8: memref<1x8x1xf32, #tpu.memory_space<vmem>>, %arg9: memref<1x8x1xf32, #tpu.memory_space<vmem>>, %arg10: memref<1x8x128xf32, #tpu.memory_space<vmem>>) attributes {dimension_semantics = [#tpu.dimension_semantics<parallel>, #tpu.dimension_semantics<parallel>, #tpu.dimension_semantics<arbitrary>], iteration_bounds = array<i64: 2, 1, 1>, scalar_prefetch = 0 : i64, scratch_operands = 4 : i64, tpu.core_type = #tpu.core_type<tc>, window_params = [{transform_indices = @transform_0, window_bounds = array<i64: 1, 8, 128>}, {transform_indices = @transform_1, window_bounds = array<i64: 1, 8, 128>}, {transform_indices = @transform_2, window_bounds = array<i64: 1, 8, 128>}, {transform_indices = @transform_3, window_bounds = array<i64: 1, 8, 128>}]} {
    %c0_i32 = arith.constant 0 : i32
    %0 = arith.cmpi eq, %arg2, %c0_i32 : i32
    %1 = arith.extui %0 : i1 to i32
    %c0_i32_0 = arith.constant 0 : i32
    %2 = arith.cmpi ne, %1, %c0_i32_0 : i32
    scf.if %2 {
      %c0_32 = arith.constant 0 : index
      %c0_33 = arith.constant 0 : index
      %c0_34 = arith.constant 0 : index
      %35 = vector.load %arg3[%c0_32, %c0_33, %c0_34] : memref<1x8x128xf32, #tpu.memory_space<vmem>>, vector<1x8x128xf32>
      %cst_35 = arith.constant 0.176776692 : f32
      %36 = vector.broadcast %cst_35 : f32 to vector<1x8x128xf32>
      %37 = arith.mulf %35, %36 : vector<1x8x128xf32>
      %38 = arith.truncf %37 : vector<1x8x128xf32> to vector<1x8x128xbf16>
      %c0_36 = arith.constant 0 : index
      %c0_37 = arith.constant 0 : index
      %c0_38 = arith.constant 0 : index
      %39 = vector.load %arg7[%c0_36, %c0_37, %c0_38] : memref<1x8x128xbf16, #tpu.memory_space<vmem>>, vector<1x8x128xbf16>
      tpu.vector_store %arg7[%c0_36, %c0_37, %c0_38], %38 {strides = array<i32>} : memref<1x8x128xbf16, #tpu.memory_space<vmem>>, vector<1x8x128xbf16>,
      %cst_39 = arith.constant 0xFF800000 : f32
      %40 = vector.broadcast %cst_39 : f32 to vector<1x8x1xf32>
      %c0_40 = arith.constant 0 : index
      %c0_41 = arith.constant 0 : index
      %c0_42 = arith.constant 0 : index
      %41 = vector.load %arg8[%c0_40, %c0_41, %c0_42] : memref<1x8x1xf32, #tpu.memory_space<vmem>>, vector<1x8x1xf32>
      tpu.vector_store %arg8[%c0_40, %c0_41, %c0_42], %40 {strides = array<i32>} : memref<1x8x1xf32, #tpu.memory_space<vmem>>, vector<1x8x1xf32>,
      %cst_43 = arith.constant 0.000000e+00 : f32
      %42 = vector.broadcast %cst_43 : f32 to vector<1x8x1xf32>
      %c0_44 = arith.constant 0 : index
      %c0_45 = arith.constant 0 : index
      %c0_46 = arith.constant 0 : index
      %43 = vector.load %arg9[%c0_44, %c0_45, %c0_46] : memref<1x8x1xf32, #tpu.memory_space<vmem>>, vector<1x8x1xf32>
      tpu.vector_store %arg9[%c0_44, %c0_45, %c0_46], %42 {strides = array<i32>} : memref<1x8x1xf32, #tpu.memory_space<vmem>>, vector<1x8x1xf32>,
      %cst_47 = arith.constant 0.000000e+00 : f32
      %44 = vector.broadcast %cst_47 : f32 to vector<1x8x128xf32>
      %c0_48 = arith.constant 0 : index
      %c0_49 = arith.constant 0 : index
      %c0_50 = arith.constant 0 : index
      %45 = vector.load %arg10[%c0_48, %c0_49, %c0_50] : memref<1x8x128xf32, #tpu.memory_space<vmem>>, vector<1x8x128xf32>
      tpu.vector_store %arg10[%c0_48, %c0_49, %c0_50], %44 {strides = array<i32>} : memref<1x8x128xf32, #tpu.memory_space<vmem>>, vector<1x8x128xf32>,
    } else {
    }
    %c0 = arith.constant 0 : index
    %c0_1 = arith.constant 0 : index
    %c0_2 = arith.constant 0 : index
    %3 = vector.load %arg7[%c0, %c0_1, %c0_2] : memref<1x8x128xbf16, #tpu.memory_space<vmem>>, vector<1x8x128xbf16>
    %c0_3 = arith.constant 0 : index
    %c0_4 = arith.constant 0 : index
    %c0_5 = arith.constant 0 : index
    %4 = vector.load %arg4[%c0_3, %c0_4, %c0_5] : memref<1x8x128xf32, #tpu.memory_space<vmem>>, vector<1x8x128xf32>
    %5 = arith.truncf %4 : vector<1x8x128xf32> to vector<1x8x128xbf16>
    "tpu.trace_start"() <{level = 10 : i32, message = "bqd,bkd->bqk"}> : () -> ()
    %cst = arith.constant dense<0.000000e+00> : vector<1x8x8xf32>
    %6 = tpu.matmul %3, %5, %cst {dimension_numbers = #tpu.dot_dimension_numbers<[2], [2], [1], [1], [0, 0, 0, 1, 1, 1], [0], [0]>} : vector<1x8x128xbf16>, vector<1x8x128xbf16>, vector<1x8x8xf32> -> vector<1x8x8xf32>
    "tpu.trace_stop"() : () -> ()
    %c0_6 = arith.constant 0 : index
    %c0_7 = arith.constant 0 : index
    %c0_8 = arith.constant 0 : index
    %7 = vector.load %arg8[%c0_6, %c0_7, %c0_8] : memref<1x8x1xf32, #tpu.memory_space<vmem>>, vector<1x8x1xf32>
    %cst_9 = arith.constant dense<0xFF800000> : vector<1x8xf32>
    %8 = vector.multi_reduction <maximumf>, %6, %cst_9 [2] : vector<1x8x8xf32> to vector<1x8xf32>
    %9 = vector.shape_cast %8 : vector<1x8xf32> to vector<1x8x1xf32>
    %10 = arith.maximumf %7, %9 : vector<1x8x1xf32>
    %11 = arith.subf %7, %10 : vector<1x8x1xf32>
    %12 = math.exp %11 : vector<1x8x1xf32>
    %13 = vector.broadcast %10 : vector<1x8x1xf32> to vector<1x8x8xf32>
    %14 = arith.subf %6, %13 : vector<1x8x8xf32>
    %15 = math.exp %14 : vector<1x8x8xf32>
    %c0_10 = arith.constant 0 : index
    %c0_11 = arith.constant 0 : index
    %c0_12 = arith.constant 0 : index
    %16 = vector.load %arg9[%c0_10, %c0_11, %c0_12] : memref<1x8x1xf32, #tpu.memory_space<vmem>>, vector<1x8x1xf32>
    %17 = arith.mulf %12, %16 : vector<1x8x1xf32>
    %cst_13 = arith.constant dense<0.000000e+00> : vector<1x8xf32>
    %18 = vector.multi_reduction <add>, %15, %cst_13 [2] : vector<1x8x8xf32> to vector<1x8xf32>
    %19 = vector.shape_cast %18 : vector<1x8xf32> to vector<1x8x1xf32>
    %20 = arith.addf %17, %19 : vector<1x8x1xf32>
    %c0_14 = arith.constant 0 : index
    %c0_15 = arith.constant 0 : index
    %c0_16 = arith.constant 0 : index
    %21 = vector.load %arg9[%c0_14, %c0_15, %c0_16] : memref<1x8x1xf32, #tpu.memory_space<vmem>>, vector<1x8x1xf32>
    tpu.vector_store %arg9[%c0_14, %c0_15, %c0_16], %20 {strides = array<i32>} : memref<1x8x1xf32, #tpu.memory_space<vmem>>, vector<1x8x1xf32>,
    %c0_17 = arith.constant 0 : index
    %c0_18 = arith.constant 0 : index
    %c0_19 = arith.constant 0 : index
    %22 = vector.load %arg10[%c0_17, %c0_18, %c0_19] : memref<1x8x128xf32, #tpu.memory_space<vmem>>, vector<1x8x128xf32>
    %23 = vector.broadcast %12 : vector<1x8x1xf32> to vector<1x8x128xf32>
    %24 = arith.mulf %23, %22 : vector<1x8x128xf32>
    %25 = arith.truncf %15 : vector<1x8x8xf32> to vector<1x8x8xbf16>
    %c0_20 = arith.constant 0 : index
    %c0_21 = arith.constant 0 : index
    %c0_22 = arith.constant 0 : index
    %26 = vector.load %arg5[%c0_20, %c0_21, %c0_22] : memref<1x8x128xf32, #tpu.memory_space<vmem>>, vector<1x8x128xf32>
    %27 = arith.truncf %26 : vector<1x8x128xf32> to vector<1x8x128xbf16>
    "tpu.trace_start"() <{level = 10 : i32, message = "bqk,bkd->bqd"}> : () -> ()
    %cst_23 = arith.constant dense<0.000000e+00> : vector<1x8x128xf32>
    %28 = tpu.matmul %25, %27, %cst_23 {dimension_numbers = #tpu.dot_dimension_numbers<[2], [1], [1], [2], [0, 0, 0, 1, 1, 2], [0], [0]>} : vector<1x8x8xbf16>, vector<1x8x128xbf16>, vector<1x8x128xf32> -> vector<1x8x128xf32>
    "tpu.trace_stop"() : () -> ()
    %29 = arith.addf %24, %28 : vector<1x8x128xf32>
    %c0_24 = arith.constant 0 : index
    %c0_25 = arith.constant 0 : index
    %c0_26 = arith.constant 0 : index
    %30 = vector.load %arg10[%c0_24, %c0_25, %c0_26] : memref<1x8x128xf32, #tpu.memory_space<vmem>>, vector<1x8x128xf32>
    tpu.vector_store %arg10[%c0_24, %c0_25, %c0_26], %29 {strides = array<i32>} : memref<1x8x128xf32, #tpu.memory_space<vmem>>, vector<1x8x128xf32>,
    %c0_27 = arith.constant 0 : index
    %c0_28 = arith.constant 0 : index
    %c0_29 = arith.constant 0 : index
    %31 = vector.load %arg8[%c0_27, %c0_28, %c0_29] : memref<1x8x1xf32, #tpu.memory_space<vmem>>, vector<1x8x1xf32>
    tpu.vector_store %arg8[%c0_27, %c0_28, %c0_29], %10 {strides = array<i32>} : memref<1x8x1xf32, #tpu.memory_space<vmem>>, vector<1x8x1xf32>,
    %c0_i32_30 = arith.constant 0 : i32
    %32 = arith.cmpi eq, %arg2, %c0_i32_30 : i32
    %33 = arith.extui %32 : i1 to i32
    %c0_i32_31 = arith.constant 0 : i32
    %34 = arith.cmpi ne, %33, %c0_i32_31 : i32
    scf.if %34 {
      %c0_32 = arith.constant 0 : index
      %c0_33 = arith.constant 0 : index
      %c0_34 = arith.constant 0 : index
      %35 = vector.load %arg9[%c0_32, %c0_33, %c0_34] : memref<1x8x1xf32, #tpu.memory_space<vmem>>, vector<1x8x1xf32>
      %36 = tpu.reciprocal %35 : vector<1x8x1xf32> -> vector<1x8x1xf32>
      %c0_35 = arith.constant 0 : index
      %c0_36 = arith.constant 0 : index
      %c0_37 = arith.constant 0 : index
      %37 = vector.load %arg10[%c0_35, %c0_36, %c0_37] : memref<1x8x128xf32, #tpu.memory_space<vmem>>, vector<1x8x128xf32>
      %38 = vector.broadcast %36 : vector<1x8x1xf32> to vector<1x8x128xf32>
      %39 = arith.mulf %37, %38 : vector<1x8x128xf32>
      %c0_38 = arith.constant 0 : index
      %c0_39 = arith.constant 0 : index
      %c0_40 = arith.constant 0 : index
      %40 = vector.load %arg6[%c0_38, %c0_39, %c0_40] : memref<1x8x128xf32, #tpu.memory_space<vmem>>, vector<1x8x128xf32>
      tpu.vector_store %arg6[%c0_38, %c0_39, %c0_40], %39 {strides = array<i32>} : memref<1x8x128xf32, #tpu.memory_space<vmem>>, vector<1x8x128xf32>,
    } else {
    }
    return
  }
  func.func @transform_0(%arg0: i32, %arg1: i32, %arg2: i32) -> (i32, i32, i32) {
    %c0_i32 = arith.constant 0 : i32
    %c0_i32_0 = arith.constant 0 : i32
    return %arg0, %arg1, %c0_i32 : i32, i32, i32
  }
  func.func @transform_1(%arg0: i32, %arg1: i32, %arg2: i32) -> (i32, i32, i32) {
    %c0_i32 = arith.constant 0 : i32
    %c0_i32_0 = arith.constant 0 : i32
    return %arg0, %arg2, %c0_i32 : i32, i32, i32
  }
  func.func @transform_2(%arg0: i32, %arg1: i32, %arg2: i32) -> (i32, i32, i32) {
    %c0_i32 = arith.constant 0 : i32
    %c0_i32_0 = arith.constant 0 : i32
    return %arg0, %arg2, %c0_i32 : i32, i32, i32
  }
  func.func @transform_3(%arg0: i32, %arg1: i32, %arg2: i32) -> (i32, i32, i32) {
    %c0_i32 = arith.constant 0 : i32
    %c0_i32_0 = arith.constant 0 : i32
    return %arg0, %arg1, %c0_i32 : i32, i32, i32
  }
}

</mosaic_0001>

<bundles_post_ra>
// kernel: tpu_custom_call.1
= control target key start
LH: loop header
LB: loop body
LE: loop exit
PB: predicated region body
PF: predicated region fallthrough
CT: control target
= control target key end

     0   :  { %s1107_s0 = inlined_call_operand.hbm [shape: f32[2,8,128], index: 0, kind: input, shape index: {}]   ;;  %s1108_s1 = inlined_call_operand.hbm [shape: f32[2,8,128], index: 1, kind: input, shape index: {}]   ;;  %s1109_s2 = inlined_call_operand.hbm [shape: f32[2,8,128], index: 2, kind: input, shape index: {}]   ;;  %s1110_s3 = inlined_call_operand.hbm [shape: f32[2,8,128], index: 3, kind: output, shape index: {}]  }
   0x1   :  { %1114 = sst [smem:[#allocation18_spill]] %s1108_s1 }
   0x2   :  { %8 = vsyncpa [#allocation7], 0 }
   0x3   :  { %10 = vsyncpa [#allocation7 + $0x1], 0 }
   0x4   :  { %11 = vsyncpa [#allocation10], 0 }
   0x5   :  { %13 = vsyncpa [#allocation10 + $0x1], 0 }
   0x6   :  { %14 = vsyncpa [#allocation8], 0 }
   0x7   :  { %16 = vsyncpa [#allocation8 + $0x1], 0  ;;  %s902_s12 = smov 0   ;;  %s904_s13 = smov 0  }
   0x8   :  { %s906_s14 = smov 0   ;;  %s908_s15 = smov 0  }
   0x9   :  { %s910_s16 = smov 0   ;;  %s912_s17 = smov 0  }
   0xa LB: > { %1115 = sst [smem:[#allocation16_spill]] %s868_s16  ;;  %s933_s18 = sadd.s32 4294967295, %s872_s17   ;;  %s872_s17 = sphi %s912_s17, %s22_s17   ;;  %s868_s16 = sphi %s910_s16, %s1127_s16   ;;  %s864_s15 = sphi %s908_s15, %s1126_s15   ;;  %s860_s14 = sphi %s906_s14, %s1130_s14   ;;  %s856_s13 = sphi %s904_s13, %s1129_s13   ;;  %s852_s12 = sphi %s902_s12, %s1128_s12  }
   0xb   : > { %s585_s19 = sadd.s32 4294967294, %s872_s17   ;;  %s41_s20 = sadd.s32 1, %s868_s16 }
   0xc   : > { %s50_s21 = sadd.s32 1, %s860_s14  ;;  %p43_p0 = scmp.ge.s32.totalorder %s41_s20, 2 }
   0xd   : > { %p57_p1 = scmp.ne.s32.totalorder %s860_s14, %s856_s13  ;;  %p58_p2 = scmp.eq.s32.totalorder %s872_s17, 0 }
   0xe   : > { %p63_p3 = scmp.ne.s32.totalorder %s856_s13, %s852_s12  ;;  %s1132_s20 = smov (%p43_p0, %s41_s20), 0 }
   0xf   : > { %1116 = sst [smem:[#allocation17_spill]] %s1132_s20  ;;  %p945_p4 = por %p58_p2, %p57_p1 }
  0x10   : > { %p64_p5 = scmp.eq.s32.totalorder %s933_s18, 0  ;;  %s45_s23 = ssub.s32 %s868_s16, %s1132_s20 }
  0x11   : > { %p145_p6 = scmp.eq.s32.totalorder %s933_s18, 1  ;;  %p48_p7 = scmp.eq.s32.totalorder %s45_s23, 0 }
  0x12   : > { %p953_p8 = por %p64_p5, %p63_p3  ;;  %p151_p10 = scmp.eq.s32.totalorder %s585_s19, 1 }
  0x13   : > { %p957_p9 = por %p145_p6, %p57_p1  ;;  %p642_p13 = scmp.lt.s32.totalorder %s872_s17, 2 }
  0x14   : > { %s962_s26 = scalar_select %p48_p7, %s860_s14, %s50_s21  }
  0x15   : > { %p964_p11 = por %p151_p10, %p63_p3  ;;  %s1111_s28 = sand.u32 1, %s860_s14  }
  0x16   : > { %s973_s29 = sshll.u32 %s1111_s28, 3  ;;  %s976_s30 = sshll.u32 %s868_s16, 7 }
  0x17   : > { %p980_p0 = pnand %p642_p13, %p945_p4  ;;  %s190_s5 = sand.u32 1, %s872_s17  }
  0x18   : > { %s1122_s1 = sld [smem:[#allocation18_spill]]  ;;  %s194_s9 = scalar_lea.vmem [#allocation9], %s973_s29 }
  0x19   : > { %s202_s10 = sshll.u32 %s194_s9, 4  ;;  %p594_p1 = scmp.ge.s32.totalorder %s872_s17, 1  ;;  %s203_s10 = int_to_ptr.vmem [resolvable:$true] %s202_s10 }
  0x1a   : > { %p226_p2 = scmp.lt.s32.totalorder %s872_s17, 3  ;;  %s992_s11 = scalar_lea.sflag [#allocation10], %s190_s5 }
  0x1b   : > { %p706_p3 = pneg %p980_p0  ;;  %s717_s19 = scalar_lea.vmem %s203_s10, 128 }
  0x1c   : > { %p718_p4 = scmp.ne.s32.totalorder %s203_s10, %s717_s19  ;;  %s874_s21 = smov [#allocation9]  }
  0x1d   : > { %s722_s22 = sshll.u32 %s874_s21, 4  ;;  %s723_s22 = int_to_ptr.vmem [resolvable:$false] %s722_s22 }
  0x1e   : > { %s200_s8 = scalar_lea.hbm %s1122_s1, %s976_s30  ;;  %p720_p5 = pnand %p718_p4, %p706_p3 }
  0x1f   : > { %s724_s23 = scalar_lea.vmem %s723_s22, 256  ;;  %p725_p7 = scmp.lt.s32.totalorder %s203_s10, %s723_s22 }
  0x20   : > { %p721_p6 = pneg %p720_p5  ;;  %p726_p10 = scmp.lt.s32.totalorder %s724_s23, %s717_s19 }
  0x22   : > { %p727_p13 = por %p726_p10, %p725_p7 }
  0x24   : > { %p728_p12 = pnand %p727_p13, %p721_p6 }
  0x26   : > { %731 = shalt.err (!%p728_p12)
}
  0x27   : > { %634 = dma.hbm_to_vmem [thread:$0]  (!%p980_p0), %s200_s8, 128, %s203_s10, %s992_s11  }
  0x28   : > { %p1006_p4 = pnand %p594_p1, %p226_p2  ;;  %s181_s9 = scalar_lea.hbm %s1107_s0, %s976_s30 }
  0x29   : > { %s175_s19 = scalar_lea.vmem [#allocation6], %s973_s29  ;;  %s219_s28 = scalar_lea.hbm %s1109_s2, %s976_s30 }
  0x2a   : > { %s183_s21 = sshll.u32 %s175_s19, 4  ;;  %s1124_s1 = sand.u32 1, %s860_s14   ;;  %s184_s21 = int_to_ptr.vmem [resolvable:$true] %s183_s21 }
  0x2b   : > { %s172_s20 = scalar_lea.sflag [#allocation7], %s1124_s1  ;;  %s745_s8 = scalar_lea.vmem %s184_s21, 128 }
  0x2c   : > { %p746_p12 = scmp.ne.s32.totalorder %s184_s21, %s745_s8  ;;  %s875_s10 = smov [#allocation6]  }
  0x2d   : > { %s750_s16 = sshll.u32 %s875_s10, 4  ;;  %s751_s16 = int_to_ptr.vmem [resolvable:$false] %s750_s16 }
  0x2e   : > { %p748_p1 = pnand %p746_p12, %p706_p3  ;;  %s752_s6 = scalar_lea.vmem %s751_s16, 256 }
  0x2f   : > { %p753_p5 = scmp.lt.s32.totalorder %s184_s21, %s751_s16  ;;  %p754_p6 = scmp.lt.s32.totalorder %s752_s6, %s745_s8 }
  0x30   : > { %p749_p2 = pneg %p748_p1 }
  0x31   : > { %p755_p7 = por %p754_p6, %p753_p5 }
  0x33   : > { %p756_p10 = pnand %p755_p7, %p749_p2 }
  0x35   : > { %759 = shalt.err (!%p756_p10)
}
  0x36   : > { %631 = dma.hbm_to_vmem [thread:$0]  (!%p980_p0), %s181_s9, 128, %s184_s21, %s172_s20  }
  0x37   : > { %s213_s1 = scalar_lea.vmem [#allocation11], %s973_s29  ;;  %s876_s22 = smov [#allocation11]  }
  0x38   : > { %s221_s7 = sshll.u32 %s213_s1, 4  ;;  %s778_s16 = sshll.u32 %s876_s22, 4  ;;  %s222_s7 = int_to_ptr.vmem [resolvable:$true] %s221_s7  ;;  %s779_s16 = int_to_ptr.vmem [resolvable:$false] %s778_s16 }
  0x39   : > { %s773_s19 = scalar_lea.vmem %s222_s7, 128  ;;  %s780_s23 = scalar_lea.vmem %s779_s16, 256 }
  0x3a   : > { %p774_p13 = scmp.ne.s32.totalorder %s222_s7, %s773_s19  ;;  %p781_p2 = scmp.lt.s32.totalorder %s222_s7, %s779_s16 }
  0x3b   : > { %p782_p5 = scmp.lt.s32.totalorder %s780_s23, %s773_s19 }
  0x3c   : > { %p776_p12 = pnand %p774_p13, %p706_p3 }
  0x3d   : > { %p783_p6 = por %p782_p5, %p781_p2 }
  0x3e   : > { %p777_p1 = pneg %p776_p12 }
  0x40   : > { %p784_p7 = pnand %p783_p6, %p777_p1 }
  0x42   : > { %787 = shalt.err (!%p784_p7)
}
  0x43   : > { %637 = dma.hbm_to_vmem [thread:$0]  (!%p980_p0), %s219_s28, 128, %s222_s7, %s992_s11  }
  0x44   : > { %230 = sbr.rel (%p1006_p4) target bundleno = 868 (0x364), region = 32  ;;  %s1041_s9 = sand.u32 (!%p1006_p4), 1, %s856_s13  }
  0x45   : > { %s1044_s21 = sshll.u32 (!%p1006_p4), %s1041_s9, 3  ;;  %s233_s4 = scalar_lea.sflag (!%p1006_p4), [#allocation7], %s1041_s9 }
  0x46   : > { %s236_s8 = scalar_lea.vmem (!%p1006_p4), [#allocation6], %s1044_s21 }
  0x49   : > { %839 = dma.done.wait (%p953_p8), %s233_s4, 128  }
  0x4a   : > { %841 = vsyncadd (%p953_p8), %s233_s4, 4294967168  ;;  %s241_s28 = sand.u32 1, %s933_s18   ;;  %s245_s11 = scalar_lea.vmem [#allocation9], %s1044_s21 }
  0x4b   : > { %s242_s30 = scalar_lea.sflag [#allocation10], %s241_s28 }
  0x4c   : > { %843 = dma.done.wait (%p953_p8), %s242_s30, 256  }
  0x4d   : > { %845 = vsyncadd (%p953_p8), %s242_s30, 4294967040  ;;  %vm296_vm0 = vcmask 7168   ;;  %v877_v0 = vmov 0.0   ;;  %vm878_vm1 = vmmov 0   ;;  %v301_v1 = vld [vmem:[%s245_s11] sm:$0xff]  ;;  %v292_v2 = vld [vmem:[%s236_s8] sm:$0xff] }
  0x4e   : > { %298 = vst.msk [vmem:[#allocation4] sm:$0xff] %vm296_vm0, %v877_v0  ;;  %608 = vmatprep.subr.bf16.mxu0 %v877_v0  ;;  %610 = vmatprep.mubr.msk.bf16.mxu0 %vm878_vm1, %v877_v0  ;;  %v302_v3 = vpack.c.bf16 %v301_v1, %v301_v1  ;;  %v293_v4 = vmul.f32 0.17677669, %v292_v2  ;;  %v879_v7 = vmov -inf   ;;  %vm344_vm2 = vcmask 64512   ;;  %s254_s18 = scalar_lea.vmem [#allocation11], %s1044_s21 }
  0x4f   : > { %614 = vmatprep.subr.bf16.mxu1 %v877_v0  ;;  %616 = vmatprep.mubr.msk.bf16.mxu1 %vm878_vm1, %v877_v0  ;;  %297 = vst.msk [vmem:[#allocation3] sm:$0xff] %vm296_vm0, %v879_v7  ;;  %v880_v13 = vmov 0   ;;  %v376_v18 = vld [vmem:[%s254_s18] sm:$0xff]  ;;  %vm381_vm3 = vcmask 1043456   ;;  %s601_s24 = sshll.u32 %s864_s15, 7  ;;  %s286_s5 = scalar_lea.vmem [#allocation12], %s1044_s21 }
  0x50   : > { %609 = vmatpush3.bf16.xpose.msra.mxu0 %v302_v3  ;;  %v294_v5 = vpack.c.bf16 %v293_v4, %v293_v4  ;;  %696 = vset.pattern.permute.xlu0 %v880_v13  ;;  %v377_v19 = vpack.c.bf16 %v376_v18, %v376_v18  ;;  %s456_s10 = sshll.u32 %s286_s5, 4  ;;  %s454_s7 = scalar_lea.hbm %s1110_s3, %s601_s24  ;;  %s457_s10 = int_to_ptr.vmem [resolvable:$true] %s456_s10 }
  0x51   : > { %697 = vset.pattern.permute.xlu1 %v880_v13  ;;  %s442_s19 = scalar_lea.sflag [#allocation8], %s1041_s9  ;;  %s788_s22 = scalar_lea.vmem %s457_s10, 128 }
  0x52   : > { %295 = vst [vmem:[#allocation2] sm:$0xf] %v294_v5  ;;  %v383_v20 = vsel %vm381_vm3, %v377_v19, 0  ;;  %p789_p8 = scmp.ne.s32.totalorder %s457_s10, %s788_s22  ;;  %s881_s16 = smov [#allocation12]  }
  0x53   : > { %615 = vmatpush3.bf16.msra.mxu1 %v383_v20  ;;  %s792_s23 = sshll.u32 %s881_s16, 4  ;;  %s793_s23 = int_to_ptr.vmem [resolvable:$false] %s792_s23 }
  0x54   : > { %p790_p0 = pnand %p789_p8, %p957_p9  ;;  %s794_s15 = scalar_lea.vmem %s793_s23, 256 }
  0x55   : > { %v360_v29 = vld [vmem:[#allocation4] sm:$0xff]  ;;  %p795_p4 = scmp.lt.s32.totalorder %s457_s10, %s793_s23  ;;  %p796_p10 = scmp.lt.s32.totalorder %s794_s15, %s788_s22 }
  0x56   : > { %v343_v14 = vld [vmem:[#allocation3] sm:$0xff]  ;;  %p791_p3 = pneg %p790_p0 }
  0x57   : > { %p797_p13 = por %p796_p10, %p795_p4 }
  0x59   : > { %v300_v6 = vld [vmem:[#allocation2] sm:$0xf]  ;;  %p798_p12 = pnand %p797_p13, %p791_p3 }
  0x5a   : > { %611 = vmatmul.mubr.bf16.vlgmr.msra.gmra.mxu0 %v300_v6 }
 0x11a   : > { %v337_v8 = vpop.f32.mrf.mxu0 }
 0x11b   : > { %v345_v9 = vsel %vm344_vm2, %v337_v8, -inf }
 0x11c   : > { %346 = vmax.xlane.f32.xlu0 %v345_v9  ;;  %v612_v10 = vpop.f32.mrf.mxu0 }
 0x11e   : > { %v340_v11 = vpop.f32.mrf.mxu0 }
 0x120   : > { %v613_v12 = vpop.f32.mrf.mxu0 }
 0x1a5   : > { %v347_v15 = vpop.xlane.xlu0 %346 }
 0x1a6   : > { %v348_v16 = vmax.f32 %v343_v14, %v347_v15 }
 0x1a8   : > { %v349_v17 = vsub.f32 %v343_v14, %v348_v16  ;;  %427 = vst.msk [vmem:[#allocation3] sm:$0xff] %vm296_vm0, %v348_v16  ;;  %354 = vperm.xlu0 %696, %v348_v16  }
 0x1aa   : > { %v350_v25 = vmul.f32 1.442695, %v349_v17 }
 0x223   : > { %v355_v21 = vpop.permute.xlu0 %354 }
 0x224   : > { %v357_v22 = vsub.f32 %v337_v8, %v355_v21 }
 0x226   : > { %v358_v23 = vmul.f32 1.442695, %v357_v22 }
 0x228   : > { %698 = vpow2.f32 %v358_v23 }
 0x229   : > { %700 = vpow2.f32 %v350_v25 }
 0x235   : > { %v699_v24 = vpop.eup %698 }
 0x236   : > { %v362_v26 = vsel %vm344_vm2, %v699_v24, 0.0  ;;  %v375_v27 = vpack.c.bf16 %v699_v24, %v699_v24  ;;  %v701_v28 = vpop.eup %700 }
 0x237   : > { %363 = vadd.xlane.f32.xlu1 %v362_v26  ;;  %v361_v30 = vmul.f32 %v701_v28, %v360_v29 }
 0x238   : > { %617 = vmatmul.mubr.msk.bf16.vlgmr.msra.gmra.mxu1 %vm344_vm2, %v375_v27 }
 0x248   : > { %371 = vperm.xlu1 %697, %v701_v28  }
 0x2c0   : > { %v364_v31 = vpop.xlane.xlu1 %363 }
 0x2c1   : > { %v365_v32 = vadd.f32 %v364_v31, %v361_v30 }
 0x2c3   : > { %367 = vst.msk [vmem:[#allocation4] sm:$0xff] %vm296_vm0, %v365_v32 }
 0x2c4   : > { %v372_v39 = vpop.permute.xlu1 %371 }
 0x2c5   : > { %v374_v40 = vmul.f32 0.0, %v372_v39 }
 0x2ca   : > { %v431_v33 = vld [vmem:[#allocation4] sm:$0xff] }
 0x2cb   : > { %702 = vrcp.f32 %v431_v33 }
 0x2d8   : > { %v703_v34 = vpop.eup %702 }
 0x2d9   : > { %436 = vperm.xlu1 %697, %v703_v34  }
 0x2f8   : > { %v419_v35 = vpop.f32.mrf.mxu1 }
 0x2f9   : > { %v425_v41 = vadd.f32 %v419_v35, %v374_v40 }
 0x2fa   : > { %v618_v36 = vpop.f32.mrf.mxu1 }
 0x2fc   : > { %v422_v37 = vpop.f32.mrf.mxu1 }
 0x2fe   : > { %v619_v38 = vpop.f32.mrf.mxu1 }
 0x354   : > { %v437_v42 = vpop.permute.xlu1 %436 }
 0x355   : > { %v439_v43 = vmul.f32 %v437_v42, %v425_v41 }
 0x357   : > { %440 = vst [vmem:[%s286_s5] sm:$0xff] %v439_v43 }
 0x358   : > { %801 = shalt.err (!%p798_p12)
}
 0x359   : > { %s802_s20 = scalar_lea.hbm %s454_s7, 128  ;;  %s806_s21 = scalar_lea.hbm %s1110_s3, 256 }
 0x35a   : > { %p803_p1 = scmp.ne.s32.totalorder %s454_s7, %s802_s20  ;;  %p807_p6 = scmp.lt.s32.totalorder %s454_s7, %s1110_s3 }
 0x35b   : > { %p808_p7 = scmp.lt.s32.totalorder %s806_s21, %s802_s20 }
 0x35c   : > { %p804_p2 = pnand %p803_p1, %p957_p9 }
 0x35d   : > { %p809_p8 = por %p808_p7, %p807_p6 }
 0x35e   : > { %p805_p5 = pneg %p804_p2 }
 0x360   : > { %p810_p0 = pnand %p809_p8, %p805_p5 }
 0x362   : > { %813 = shalt.err (!%p810_p0)
}
 0x363   : > { %626 = dma.vmem_to_hbm [thread:$0]  (%p957_p9), %s457_s10, 128, %s454_s7, %s442_s19  }
 0x364 PF: > { %s468_s28 = sand.u32 1, %s852_s12   ;;  %p1125_p3 = scmp.ge.s32.totalorder %s872_s17, 2 }
 0x365   : > { %s469_s30 = scalar_lea.sflag [#allocation8], %s468_s28 }
 0x366   : > { %p639_p4 = pnand %p1125_p3, %p964_p11 }
 0x368   : > { %p640_p10 = pneg %p639_p4 }
 0x36a   : > { %847 = dma.done.wait (%p640_p10), %s469_s30, 128  }
 0x36b   : > { %849 = vsyncadd (%p640_p10), %s469_s30, 4294967168  ;;  %s22_s17 = sadd.s32 1, %s872_s17   ;;  %s1126_s15 = sld [smem:[#allocation16_spill]] }
 0x36c   : > { %p19_p13 = scmp.ge.s32.totalorder %s22_s17, 4   ;;  %s1127_s16 = sld [smem:[#allocation17_spill]] }
 0x36d   : > { %s1128_s12 = smov %s856_s13  ;;  %s1129_s13 = smov %s860_s14 }
 0x36e   : > { %s1130_s14 = smov %s962_s26  ;;  %21 = sbr.rel (!%p19_p13) target bundleno = 10 (0xa), region = 109 }
 0x373   :  { %474 = vsyncpa [#allocation7], 1 }
 0x374   :  { %476 = vsyncpa [#allocation7 + $0x1], 1 }
 0x375   :  { %477 = vsyncpa [#allocation10], 1 }
 0x376   :  { %479 = vsyncpa [#allocation10 + $0x1], 1 }
 0x377   :  { %480 = vsyncpa [#allocation8], 1 }
 0x378   :  { %482 = vsyncpa [#allocation8 + $0x1], 1 }

</bundles_post_ra>
